<compile_context>
chip_gen: v7x
topology: tpu7x:2x2x1
jax: 0.10.0
libtpu: 0.0.40
codegen_flags: <defaults>
</compile_context>

<pallas_src>
import functools

import jax
import jax.numpy as jnp
import numpy as np
from jax.experimental import pallas as pl
from jax.experimental.pallas import tpu as pltpu

EPS = 1e-5


def basic_block_kernel(xslab_ref, w1_ref, w2_ref, g1_ref, b1_ref, g2_ref, b2_ref,
                       mask_ref, out_ref, *, W, C, inv_cnt):
    """Fused conv1->bn1->relu->conv2->bn2->(+x)->relu on lane-dense row slabs.

    xslab_ref : (Rs, WC) f32   input slab, Rs = R + 16.  Rows [0,8) and the last
                               8 rows are zero context; image n occupies rows
                               [8 + n*B, 8 + n*B + H) (B = per-image block,
                               multiple of 8).  Lane layout l = w*C + c.
    w1_/w2_ref: (3*WC, WC) bf16 banded conv weights, kh taps stacked along K.
    g*/b*_ref : (1, WC) f32     BN affine params tiled over the W lane groups.
    mask_ref  : (R, 1) f32      1.0 on valid image rows of the output slab.
    out_ref   : (R, WC) f32     output slab, row r <-> input slab row r + 8.
    """
    R = out_ref.shape[0]
    WC = W * C

    mask = mask_ref[...]                                     # (R, 1)

    def conv(slab_bf, w_ref):
        # One K-stacked MXU matmul per conv: LHS lanes = [row r-1 | row r | row r+1],
        # K = 3*WC.  The banded RHS folds the 3 kw taps and the W-dir SAME padding.
        lhs = jnp.concatenate(
            [slab_bf[7:7 + R, :], slab_bf[8:8 + R, :], slab_bf[9:9 + R, :]],
            axis=1)                                          # (R, 3*WC) bf16
        return jnp.dot(lhs, w_ref[...], preferred_element_type=jnp.float32)

    def bn_scale_shift(raw, g_ref, b_ref):
        # Training-mode BN stats (biased variance) in one pass, all f32.
        # Per-lane sum / sum-of-squares over valid rows, then a log2(W) XLU roll
        # butterfly both reduces over the W lane-groups and broadcasts the
        # per-channel value back to every lane of that channel.
        rawm = raw * mask
        s1 = jnp.sum(rawm, axis=0, keepdims=True)            # (1, WC)
        s2 = jnp.sum(rawm * raw, axis=0, keepdims=True)      # (1, WC)
        stats = jnp.concatenate([s1, s2], axis=0)            # (2, WC)
        shift = C
        while shift < WC:                                    # static: log2(W) steps
            stats = stats + pltpu.roll(stats, shift, axis=1)
            shift *= 2
        mu = stats[0:1, :] * inv_cnt
        ex2 = stats[1:2, :] * inv_cnt
        var = jnp.maximum(ex2 - mu * mu, 0.0)                # clamp: cancellation
        scale = g_ref[...] * jax.lax.rsqrt(var + EPS)
        return scale, b_ref[...] - mu * scale

    # ---- conv1 (bf16 operands, f32 accumulation) ----
    x_full = xslab_ref[...]                                  # (Rs, WC) f32
    x_bf = x_full.astype(jnp.bfloat16)
    acc1 = conv(x_bf, w1_ref)                                # (R, WC) f32

    # ---- bn1 + relu (junk pad rows re-zeroed so they act as padding for conv2) ----
    sc1, sh1 = bn_scale_shift(acc1, g1_ref, b1_ref)
    h1 = jnp.maximum(acc1 * sc1 + sh1, 0.0) * mask

    # ---- rebuild conv2's bf16 slab: 8 zero context rows top and bottom ----
    zpad = jnp.zeros((8, WC), jnp.bfloat16)
    h1_slab = jnp.concatenate([zpad, h1.astype(jnp.bfloat16), zpad], axis=0)

    # ---- conv2 ----
    acc2 = conv(h1_slab, w2_ref)

    # ---- bn2 + identity residual (8-aligned f32 window of the input slab) + relu ----
    sc2, sh2 = bn_scale_shift(acc2, g2_ref, b2_ref)
    identity = x_full[8:8 + R, :]
    out_ref[...] = jnp.maximum(acc2 * sc2 + sh2 + identity, 0.0)


def _band_weights(w_oihw, W):
    """3x3 OIHW conv weight -> (3*W*Cin, W*Cout) bf16 K-stacked banded matmul RHS.

    band[kh*W*Cin + w_in*Cin + ci, w*Cout + co] = w[co, ci, kh, kw], kw = w_in - w + 1,
    zero outside the 3-tap band (encodes SAME zero-padding along W).  The kh taps are
    stacked along K to match the lane-concat LHS [row r-1 | row r | row r+1].
    """
    Cout, Cin, KH, KW = w_oihw.shape
    wk = jnp.transpose(w_oihw, (2, 3, 1, 0)).astype(jnp.float32)   # (KH,KW,Cin,Cout)
    sel = np.zeros((KW, W + 2, W), np.float32)
    for kw in range(KW):
        sel[kw, np.arange(W) + kw, np.arange(W)] = 1.0
    band = jnp.einsum("hkco,kpw->hpcwo", wk, jnp.asarray(sel))     # (KH,W+2,Cin,W,Cout)
    band = band[:, 1:W + 1]                                        # valid w_in rows
    return band.reshape(KH * W * Cin, W * Cout).astype(jnp.bfloat16)


@jax.jit
def basic_block(x_nchw, w1_oihw, w2_oihw, g1, b1, g2, b2):
    """Fused BasicBlock forward.  Input/output are NCHW (PyTorch convention)."""
    N, Cin, H, W = x_nchw.shape
    Cout = w1_oihw.shape[0]
    assert Cin == Cout, "identity residual (downsample=None) requires Cin == Cout"
    assert W > 0 and (W & (W - 1)) == 0, "BN roll butterfly needs W = power of 2"
    # TODO(synk): stride>1 / expansion>1 / downsample paths are not implemented
    # (module defaults exercised here give the identity residual).
    # TODO(synk): gate the banded-RHS formulation on WC (~12*WC^2 resident weight
    # bytes); switch to a K=9*Cin im2col matmul for large WC.
    WC = W * Cout
    B = -(-(H + 1) // 8) * 8            # per-image block rows, >= H+1, 8-aligned
    R = N * B                           # output slab rows (multiple of 8)
    Rs = R + 16                         # + 8 zero context rows top and bottom

    # ---- glue (XLA layout ops): NCHW -> 8-aligned, lane-dense row slab ----
    x_nhwc = jnp.transpose(x_nchw, (0, 2, 3, 1)).astype(jnp.float32)  # (N,H,W,C)
    xblocks = jnp.pad(x_nhwc.reshape(N, H, WC), ((0, 0), (0, B - H), (0, 0)))
    xslab = jnp.pad(xblocks.reshape(R, WC), ((8, 8), (0, 0)))         # (Rs, WC)

    w1b = _band_weights(w1_oihw, W)                                   # (3*WC, WC)
    w2b = _band_weights(w2_oihw, W)
    tile = lambda v: jnp.tile(v.astype(jnp.float32), (W,)).reshape(1, WC)
    g1t, b1t, g2t, b2t = tile(g1), tile(b1), tile(g2), tile(b2)

    rows = np.arange(R)
    mask = ((rows % B) < H).astype(np.float32).reshape(R, 1)          # valid rows

    full = lambda shape: pl.BlockSpec(shape, lambda i: (0,) * len(shape))

    out_slab = pl.pallas_call(
        functools.partial(basic_block_kernel, W=W, C=Cout,
                          inv_cnt=1.0 / float(N * H * W)),
        out_shape=jax.ShapeDtypeStruct((R, WC), jnp.float32),
        grid=(1,),
        in_specs=[
            full((Rs, WC)),
            full((3 * WC, WC)), full((3 * WC, WC)),
            full((1, WC)), full((1, WC)), full((1, WC)), full((1, WC)),
            full((R, 1)),
        ],
        out_specs=full((R, WC)),
        compiler_params=pltpu.CompilerParams(
            dimension_semantics=("arbitrary",),
            vmem_limit_bytes=32 * 1024 * 1024),
    )(xslab, w1b, w2b, g1t, b1t, g2t, b2t, jnp.asarray(mask))

    # ---- glue: drop per-image pad rows, back to NCHW ----
    out_nhwc = out_slab.reshape(N, B, W, Cout)[:, :H]
    return jnp.transpose(out_nhwc, (0, 3, 1, 2))


def basic_block_reference(x_nchw, w1, w2, g1, b1, g2, b2):
    """Pure-JAX f32 reference (NCHW, matches PyTorch training-mode BN)."""
    def conv(x, w):
        return jax.lax.conv_general_dilated(
            x, w, window_strides=(1, 1), padding="SAME",
            dimension_numbers=("NCHW", "OIHW", "NCHW"))

    def bn(x, g, b):
        mu = jnp.mean(x, axis=(0, 2, 3), keepdims=True)
        var = jnp.mean((x - mu) ** 2, axis=(0, 2, 3), keepdims=True)
        return (x - mu) * jax.lax.rsqrt(var + EPS) * g.reshape(1, -1, 1, 1) \
            + b.reshape(1, -1, 1, 1)

    out = jnp.maximum(bn(conv(x_nchw, w1), g1, b1), 0.0)
    out = bn(conv(out, w2), g2, b2)
    return jnp.maximum(out + x_nchw, 0.0)


if __name__ == "__main__":
    # Small deterministic problem: BasicBlock(in_channels=8, out_channels=8).
    # W * C = 128 -> exactly one lane-width of the lane-dense slabs.
    N, C, H, W = 2, 8, 16, 16
    key = jax.random.PRNGKey(0)
    kx, k1, k2, kg1, kb1, kg2, kb2 = jax.random.split(key, 7)

    x = jax.random.normal(kx, (N, C, H, W), jnp.float32)
    # conv weights in PyTorch OIHW layout, no bias (bias=False in the module)
    w1 = jax.random.normal(k1, (C, C, 3, 3), jnp.float32) * np.sqrt(2.0 / (C * 9))
    w2 = jax.random.normal(k2, (C, C, 3, 3), jnp.float32) * np.sqrt(2.0 / (C * 9))
    # BN affine params (synthetic deterministic values; PyTorch inits 1/0)
    g1 = 1.0 + 0.1 * jax.random.normal(kg1, (C,), jnp.float32)
    b1 = 0.1 * jax.random.normal(kb1, (C,), jnp.float32)
    g2 = 1.0 + 0.1 * jax.random.normal(kg2, (C,), jnp.float32)
    b2 = 0.1 * jax.random.normal(kb2, (C,), jnp.float32)

    out = jax.block_until_ready(basic_block(x, w1, w2, g1, b1, g2, b2))
    ref = jax.block_until_ready(basic_block_reference(x, w1, w2, g1, b1, g2, b2))

    # Kernel runs the conv contractions in bf16 (f32 accumulation); the reference
    # is full f32, so the comparison tolerance is loosened accordingly.
    np.testing.assert_allclose(np.asarray(out), np.asarray(ref),
                               rtol=3e-2, atol=3e-2)
    print("KERNEL_OK")
</pallas_src>

<mosaic_0001>
module attributes {stable_mosaic.version = 11 : i64} {
  func.func @basic_block_kernel(%arg0: i32, %arg1: memref<64x128xf32, #tpu.memory_space<vmem>>, %arg2: memref<384x128xbf16, #tpu.memory_space<vmem>>, %arg3: memref<384x128xbf16, #tpu.memory_space<vmem>>, %arg4: memref<1x128xf32, #tpu.memory_space<vmem>>, %arg5: memref<1x128xf32, #tpu.memory_space<vmem>>, %arg6: memref<1x128xf32, #tpu.memory_space<vmem>>, %arg7: memref<1x128xf32, #tpu.memory_space<vmem>>, %arg8: memref<48x1xf32, #tpu.memory_space<vmem>>, %arg9: memref<48x128xf32, #tpu.memory_space<vmem>>) attributes {dimension_semantics = [#tpu.dimension_semantics<arbitrary>], iteration_bounds = array<i64: 1>, scalar_prefetch = 0 : i64, scratch_operands = 0 : i64, tpu.core_type = #tpu.core_type<tc>, window_params = [{pipeline_mode = #tpu.pipeline_mode<synchronous>, transform_indices = @transform_0, window_bounds = array<i64: 64, 128>}, {pipeline_mode = #tpu.pipeline_mode<synchronous>, transform_indices = @transform_1, window_bounds = array<i64: 384, 128>}, {pipeline_mode = #tpu.pipeline_mode<synchronous>, transform_indices = @transform_2, window_bounds = array<i64: 384, 128>}, {pipeline_mode = #tpu.pipeline_mode<synchronous>, transform_indices = @transform_3, window_bounds = array<i64: 1, 128>}, {pipeline_mode = #tpu.pipeline_mode<synchronous>, transform_indices = @transform_4, window_bounds = array<i64: 1, 128>}, {pipeline_mode = #tpu.pipeline_mode<synchronous>, transform_indices = @transform_5, window_bounds = array<i64: 1, 128>}, {pipeline_mode = #tpu.pipeline_mode<synchronous>, transform_indices = @transform_6, window_bounds = array<i64: 1, 128>}, {pipeline_mode = #tpu.pipeline_mode<synchronous>, transform_indices = @transform_7, window_bounds = array<i64: 48, 1>}, {pipeline_mode = #tpu.pipeline_mode<synchronous>, transform_indices = @transform_8, window_bounds = array<i64: 48, 128>}]} {
    %c0 = arith.constant 0 : index
    %c0_0 = arith.constant 0 : index
    %0 = vector.load %arg8[%c0, %c0_0] : memref<48x1xf32, #tpu.memory_space<vmem>>, vector<48x1xf32>
    %c0_1 = arith.constant 0 : index
    %c0_2 = arith.constant 0 : index
    %1 = vector.load %arg1[%c0_1, %c0_2] : memref<64x128xf32, #tpu.memory_space<vmem>>, vector<64x128xf32>
    %2 = arith.truncf %1 : vector<64x128xf32> to vector<64x128xbf16>
    %3 = vector.extract_strided_slice %2 {offsets = [7, 0], sizes = [48, 128], strides = [1, 1]} : vector<64x128xbf16> to vector<48x128xbf16>
    %4 = vector.extract_strided_slice %2 {offsets = [8, 0], sizes = [48, 128], strides = [1, 1]} : vector<64x128xbf16> to vector<48x128xbf16>
    %5 = vector.extract_strided_slice %2 {offsets = [9, 0], sizes = [48, 128], strides = [1, 1]} : vector<64x128xbf16> to vector<48x128xbf16>
    %6 = tpu.concatenate %3, %4, %5 in 1 : vector<48x128xbf16>, vector<48x128xbf16>, vector<48x128xbf16> -> vector<48x384xbf16>
    %c0_3 = arith.constant 0 : index
    %c0_4 = arith.constant 0 : index
    %7 = vector.load %arg2[%c0_3, %c0_4] : memref<384x128xbf16, #tpu.memory_space<vmem>>, vector<384x128xbf16>
    %cst = arith.constant dense<0.000000e+00> : vector<48x128xf32>
    %8 = tpu.matmul %6, %7, %cst {dimension_numbers = #tpu.dot_dimension_numbers<[1], [0], [0], [1], [0, 0, 1, 1], [], []>} : vector<48x384xbf16>, vector<384x128xbf16>, vector<48x128xf32> -> vector<48x128xf32>
    %9 = vector.broadcast %0 : vector<48x1xf32> to vector<48x128xf32>
    %10 = arith.mulf %8, %9 : vector<48x128xf32>
    %cst_5 = arith.constant dense<0.000000e+00> : vector<128xf32>
    %11 = vector.multi_reduction <add>, %10, %cst_5 [0] : vector<48x128xf32> to vector<128xf32>
    %12 = vector.shape_cast %11 : vector<128xf32> to vector<1x128xf32>
    %13 = arith.mulf %10, %8 : vector<48x128xf32>
    %cst_6 = arith.constant dense<0.000000e+00> : vector<128xf32>
    %14 = vector.multi_reduction <add>, %13, %cst_6 [0] : vector<48x128xf32> to vector<128xf32>
    %15 = vector.shape_cast %14 : vector<128xf32> to vector<1x128xf32>
    %16 = tpu.concatenate %12, %15 in 0 : vector<1x128xf32>, vector<1x128xf32> -> vector<2x128xf32>
    %c8_i32 = arith.constant 8 : i32
    %17 = tpu.dynamic_rotate %16 by %c8_i32 dim 1 : vector<2x128xf32>, i32 -> vector<2x128xf32>
    %18 = arith.addf %16, %17 : vector<2x128xf32>
    %c16_i32 = arith.constant 16 : i32
    %19 = tpu.dynamic_rotate %18 by %c16_i32 dim 1 : vector<2x128xf32>, i32 -> vector<2x128xf32>
    %20 = arith.addf %18, %19 : vector<2x128xf32>
    %c32_i32 = arith.constant 32 : i32
    %21 = tpu.dynamic_rotate %20 by %c32_i32 dim 1 : vector<2x128xf32>, i32 -> vector<2x128xf32>
    %22 = arith.addf %20, %21 : vector<2x128xf32>
    %c64_i32 = arith.constant 64 : i32
    %23 = tpu.dynamic_rotate %22 by %c64_i32 dim 1 : vector<2x128xf32>, i32 -> vector<2x128xf32>
    %24 = arith.addf %22, %23 : vector<2x128xf32>
    %25 = vector.extract_strided_slice %24 {offsets = [0, 0], sizes = [1, 128], strides = [1, 1]} : vector<2x128xf32> to vector<1x128xf32>
    %cst_7 = arith.constant 0.001953125 : f32
    %26 = vector.broadcast %cst_7 : f32 to vector<1x128xf32>
    %27 = arith.mulf %25, %26 : vector<1x128xf32>
    %28 = vector.extract_strided_slice %24 {offsets = [1, 0], sizes = [1, 128], strides = [1, 1]} : vector<2x128xf32> to vector<1x128xf32>
    %cst_8 = arith.constant 0.001953125 : f32
    %29 = vector.broadcast %cst_8 : f32 to vector<1x128xf32>
    %30 = arith.mulf %28, %29 : vector<1x128xf32>
    %31 = arith.mulf %27, %27 : vector<1x128xf32>
    %32 = arith.subf %30, %31 : vector<1x128xf32>
    %cst_9 = arith.constant 0.000000e+00 : f32
    %33 = vector.broadcast %cst_9 : f32 to vector<1x128xf32>
    %34 = arith.maximumf %32, %33 : vector<1x128xf32>
    %c0_10 = arith.constant 0 : index
    %c0_11 = arith.constant 0 : index
    %35 = vector.load %arg4[%c0_10, %c0_11] : memref<1x128xf32, #tpu.memory_space<vmem>>, vector<1x128xf32>
    %cst_12 = arith.constant 9.99999974E-6 : f32
    %36 = vector.broadcast %cst_12 : f32 to vector<1x128xf32>
    %37 = arith.addf %34, %36 : vector<1x128xf32>
    %38 = math.rsqrt %37 : vector<1x128xf32>
    %39 = arith.mulf %35, %38 : vector<1x128xf32>
    %c0_13 = arith.constant 0 : index
    %c0_14 = arith.constant 0 : index
    %40 = vector.load %arg5[%c0_13, %c0_14] : memref<1x128xf32, #tpu.memory_space<vmem>>, vector<1x128xf32>
    %41 = arith.mulf %27, %39 : vector<1x128xf32>
    %42 = arith.subf %40, %41 : vector<1x128xf32>
    %43 = vector.broadcast %39 : vector<1x128xf32> to vector<48x128xf32>
    %44 = arith.mulf %8, %43 : vector<48x128xf32>
    %45 = vector.broadcast %42 : vector<1x128xf32> to vector<48x128xf32>
    %46 = arith.addf %44, %45 : vector<48x128xf32>
    %cst_15 = arith.constant 0.000000e+00 : f32
    %47 = vector.broadcast %cst_15 : f32 to vector<48x128xf32>
    %48 = arith.maximumf %46, %47 : vector<48x128xf32>
    %49 = vector.broadcast %0 : vector<48x1xf32> to vector<48x128xf32>
    %50 = arith.mulf %48, %49 : vector<48x128xf32>
    %cst_16 = arith.constant 0.000000e+00 : bf16
    %51 = vector.broadcast %cst_16 : bf16 to vector<8x128xbf16>
    %52 = arith.truncf %50 : vector<48x128xf32> to vector<48x128xbf16>
    %53 = tpu.concatenate %51, %52, %51 in 0 : vector<8x128xbf16>, vector<48x128xbf16>, vector<8x128xbf16> -> vector<64x128xbf16>
    %54 = vector.extract_strided_slice %53 {offsets = [7, 0], sizes = [48, 128], strides = [1, 1]} : vector<64x128xbf16> to vector<48x128xbf16>
    %55 = vector.extract_strided_slice %53 {offsets = [8, 0], sizes = [48, 128], strides = [1, 1]} : vector<64x128xbf16> to vector<48x128xbf16>
    %56 = vector.extract_strided_slice %53 {offsets = [9, 0], sizes = [48, 128], strides = [1, 1]} : vector<64x128xbf16> to vector<48x128xbf16>
    %57 = tpu.concatenate %54, %55, %56 in 1 : vector<48x128xbf16>, vector<48x128xbf16>, vector<48x128xbf16> -> vector<48x384xbf16>
    %c0_17 = arith.constant 0 : index
    %c0_18 = arith.constant 0 : index
    %58 = vector.load %arg3[%c0_17, %c0_18] : memref<384x128xbf16, #tpu.memory_space<vmem>>, vector<384x128xbf16>
    %cst_19 = arith.constant dense<0.000000e+00> : vector<48x128xf32>
    %59 = tpu.matmul %57, %58, %cst_19 {dimension_numbers = #tpu.dot_dimension_numbers<[1], [0], [0], [1], [0, 0, 1, 1], [], []>} : vector<48x384xbf16>, vector<384x128xbf16>, vector<48x128xf32> -> vector<48x128xf32>
    %60 = vector.broadcast %0 : vector<48x1xf32> to vector<48x128xf32>
    %61 = arith.mulf %59, %60 : vector<48x128xf32>
    %cst_20 = arith.constant dense<0.000000e+00> : vector<128xf32>
    %62 = vector.multi_reduction <add>, %61, %cst_20 [0] : vector<48x128xf32> to vector<128xf32>
    %63 = vector.shape_cast %62 : vector<128xf32> to vector<1x128xf32>
    %64 = arith.mulf %61, %59 : vector<48x128xf32>
    %cst_21 = arith.constant dense<0.000000e+00> : vector<128xf32>
    %65 = vector.multi_reduction <add>, %64, %cst_21 [0] : vector<48x128xf32> to vector<128xf32>
    %66 = vector.shape_cast %65 : vector<128xf32> to vector<1x128xf32>
    %67 = tpu.concatenate %63, %66 in 0 : vector<1x128xf32>, vector<1x128xf32> -> vector<2x128xf32>
    %c8_i32_22 = arith.constant 8 : i32
    %68 = tpu.dynamic_rotate %67 by %c8_i32_22 dim 1 : vector<2x128xf32>, i32 -> vector<2x128xf32>
    %69 = arith.addf %67, %68 : vector<2x128xf32>
    %c16_i32_23 = arith.constant 16 : i32
    %70 = tpu.dynamic_rotate %69 by %c16_i32_23 dim 1 : vector<2x128xf32>, i32 -> vector<2x128xf32>
    %71 = arith.addf %69, %70 : vector<2x128xf32>
    %c32_i32_24 = arith.constant 32 : i32
    %72 = tpu.dynamic_rotate %71 by %c32_i32_24 dim 1 : vector<2x128xf32>, i32 -> vector<2x128xf32>
    %73 = arith.addf %71, %72 : vector<2x128xf32>
    %c64_i32_25 = arith.constant 64 : i32
    %74 = tpu.dynamic_rotate %73 by %c64_i32_25 dim 1 : vector<2x128xf32>, i32 -> vector<2x128xf32>
    %75 = arith.addf %73, %74 : vector<2x128xf32>
    %76 = vector.extract_strided_slice %75 {offsets = [0, 0], sizes = [1, 128], strides = [1, 1]} : vector<2x128xf32> to vector<1x128xf32>
    %cst_26 = arith.constant 0.001953125 : f32
    %77 = vector.broadcast %cst_26 : f32 to vector<1x128xf32>
    %78 = arith.mulf %76, %77 : vector<1x128xf32>
    %79 = vector.extract_strided_slice %75 {offsets = [1, 0], sizes = [1, 128], strides = [1, 1]} : vector<2x128xf32> to vector<1x128xf32>
    %cst_27 = arith.constant 0.001953125 : f32
    %80 = vector.broadcast %cst_27 : f32 to vector<1x128xf32>
    %81 = arith.mulf %79, %80 : vector<1x128xf32>
    %82 = arith.mulf %78, %78 : vector<1x128xf32>
    %83 = arith.subf %81, %82 : vector<1x128xf32>
    %cst_28 = arith.constant 0.000000e+00 : f32
    %84 = vector.broadcast %cst_28 : f32 to vector<1x128xf32>
    %85 = arith.maximumf %83, %84 : vector<1x128xf32>
    %c0_29 = arith.constant 0 : index
    %c0_30 = arith.constant 0 : index
    %86 = vector.load %arg6[%c0_29, %c0_30] : memref<1x128xf32, #tpu.memory_space<vmem>>, vector<1x128xf32>
    %cst_31 = arith.constant 9.99999974E-6 : f32
    %87 = vector.broadcast %cst_31 : f32 to vector<1x128xf32>
    %88 = arith.addf %85, %87 : vector<1x128xf32>
    %89 = math.rsqrt %88 : vector<1x128xf32>
    %90 = arith.mulf %86, %89 : vector<1x128xf32>
    %c0_32 = arith.constant 0 : index
    %c0_33 = arith.constant 0 : index
    %91 = vector.load %arg7[%c0_32, %c0_33] : memref<1x128xf32, #tpu.memory_space<vmem>>, vector<1x128xf32>
    %92 = arith.mulf %78, %90 : vector<1x128xf32>
    %93 = arith.subf %91, %92 : vector<1x128xf32>
    %94 = vector.extract_strided_slice %1 {offsets = [8, 0], sizes = [48, 128], strides = [1, 1]} : vector<64x128xf32> to vector<48x128xf32>
    %95 = vector.broadcast %90 : vector<1x128xf32> to vector<48x128xf32>
    %96 = arith.mulf %59, %95 : vector<48x128xf32>
    %97 = vector.broadcast %93 : vector<1x128xf32> to vector<48x128xf32>
    %98 = arith.addf %96, %97 : vector<48x128xf32>
    %99 = arith.addf %98, %94 : vector<48x128xf32>
    %cst_34 = arith.constant 0.000000e+00 : f32
    %100 = vector.broadcast %cst_34 : f32 to vector<48x128xf32>
    %101 = arith.maximumf %99, %100 : vector<48x128xf32>
    %c0_35 = arith.constant 0 : index
    %c0_36 = arith.constant 0 : index
    %102 = vector.load %arg9[%c0_35, %c0_36] : memref<48x128xf32, #tpu.memory_space<vmem>>, vector<48x128xf32>
    tpu.vector_store %arg9[%c0_35, %c0_36], %101 {strides = array<i32>} : memref<48x128xf32, #tpu.memory_space<vmem>>, vector<48x128xf32>,
    return
  }
  func.func @transform_0(%arg0: i32) -> (i32, i32) {
    %c0_i32 = arith.constant 0 : i32
    %c0_i32_0 = arith.constant 0 : i32
    %c0_i32_1 = arith.constant 0 : i32
    return %c0_i32, %c0_i32_0 : i32, i32
  }
  func.func @transform_1(%arg0: i32) -> (i32, i32) {
    %c0_i32 = arith.constant 0 : i32
    %c0_i32_0 = arith.constant 0 : i32
    %c0_i32_1 = arith.constant 0 : i32
    return %c0_i32, %c0_i32_0 : i32, i32
  }
  func.func @transform_2(%arg0: i32) -> (i32, i32) {
    %c0_i32 = arith.constant 0 : i32
    %c0_i32_0 = arith.constant 0 : i32
    %c0_i32_1 = arith.constant 0 : i32
    return %c0_i32, %c0_i32_0 : i32, i32
  }
  func.func @transform_3(%arg0: i32) -> (i32, i32) {
    %c0_i32 = arith.constant 0 : i32
    %c0_i32_0 = arith.constant 0 : i32
    %c0_i32_1 = arith.constant 0 : i32
    return %c0_i32, %c0_i32_0 : i32, i32
  }
  func.func @transform_4(%arg0: i32) -> (i32, i32) {
    %c0_i32 = arith.constant 0 : i32
    %c0_i32_0 = arith.constant 0 : i32
    %c0_i32_1 = arith.constant 0 : i32
    return %c0_i32, %c0_i32_0 : i32, i32
  }
  func.func @transform_5(%arg0: i32) -> (i32, i32) {
    %c0_i32 = arith.constant 0 : i32
    %c0_i32_0 = arith.constant 0 : i32
    %c0_i32_1 = arith.constant 0 : i32
    return %c0_i32, %c0_i32_0 : i32, i32
  }
  func.func @transform_6(%arg0: i32) -> (i32, i32) {
    %c0_i32 = arith.constant 0 : i32
    %c0_i32_0 = arith.constant 0 : i32
    %c0_i32_1 = arith.constant 0 : i32
    return %c0_i32, %c0_i32_0 : i32, i32
  }
  func.func @transform_7(%arg0: i32) -> (i32, i32) {
    %c0_i32 = arith.constant 0 : i32
    %c0_i32_0 = arith.constant 0 : i32
    %c0_i32_1 = arith.constant 0 : i32
    return %c0_i32, %c0_i32_0 : i32, i32
  }
  func.func @transform_8(%arg0: i32) -> (i32, i32) {
    %c0_i32 = arith.constant 0 : i32
    %c0_i32_0 = arith.constant 0 : i32
    %c0_i32_1 = arith.constant 0 : i32
    return %c0_i32, %c0_i32_0 : i32, i32
  }
}

</mosaic_0001>

<bundles_post_ra>
// kernel: tile.23
= control target key start
LH: loop header
LB: loop body
LE: loop exit
PB: predicated region body
PF: predicated region fallthrough
CT: control target
= control target key end

     0   :  { %s28_s0 = inlined_call_operand.vmem [shape: f32[8], index: 0, kind: input, shape index: {}]   ;;  %s29_s1 = inlined_call_operand.vmem [shape: f32[16,8], index: 1, kind: output, shape index: {}]  }
   0x1   :  { %v4_v0 = vld [vmem:[%s28_s0] ss:$0 sm:$0xff] }
   0x2   :  { %5 = vst [vmem:[%s29_s1] sm:$0xff] %v4_v0  ;;  %8 = vst [vmem:[%s29_s1 + $0x8] sm:$0xff] %v4_v0 }

// kernel: tile.24
= control target key start
LH: loop header
LB: loop body
LE: loop exit
PB: predicated region body
PF: predicated region fallthrough
CT: control target
= control target key end

     0   :  { %s131_s10 = smov 120   ;;  %s132_s11 = smov 104   ;;  %vm3_vm0 = vcmask 64512   ;;  %vm9_vm1 = vcmask 1048512   ;;  %vm15_vm2 = vcmask 982912   ;;  %vm21_vm3 = vcmask 917312   ;;  %s207_s0 = inlined_call_operand.vmem [shape: f32[16,8], index: 0, kind: input, shape index: {}]   ;;  %s208_s1 = inlined_call_operand.vmem [shape: f32[1,128], index: 1, kind: output, shape index: {}]  }
   0x1   :  { %v101_v0 = vld [vmem:[%s207_s0 + $0xf] sm:$0x1]   ;;  %v103_v1 = vld [vmem:[%s207_s0 + $0xd] sm:$0x1]   ;;  %v102_v2 = vld [vmem:[%s207_s0 + $0xe] sm:$0x1]  }
   0x2   :  { %7 = vrot.lane.b32.xlu0 %v101_v0, %s131_s10  ;;  %19 = vrot.lane.b32.xlu1 %v103_v1, %s132_s11  ;;  %v104_v3 = vld [vmem:[%s207_s0 + $0xc] sm:$0x1]   ;;  %s133_s16 = smov 112   ;;  %s134_s17 = smov 96   ;;  %v105_v4 = vld [vmem:[%s207_s0 + $0xb] sm:$0x1]  }
   0x3   :  { %v106_v5 = vld [vmem:[%s207_s0 + $0xa] sm:$0x1]   ;;  %v2_v6 = vld [vmem:[%s207_s0] sm:$0x1]   ;;  %s135_s24 = smov 88   ;;  %s136_s25 = smov 80  }
   0x4   :  { %4 = vst.msk [vmem:[#allocation0] sm:$0x1] %vm3_vm0, %v2_v6   ;;  %v107_v7 = vld [vmem:[%s207_s0 + $0x9] sm:$0x1]   ;;  %v108_v8 = vld [vmem:[%s207_s0 + $0x8] sm:$0x1]  }
   0x5   :  { %s137_s30 = smov 72   ;;  %s138_s2 = smov 64   ;;  %v109_v9 = vld [vmem:[%s207_s0 + $0x7] sm:$0x1]   ;;  %v110_v10 = vld [vmem:[%s207_s0 + $0x6] sm:$0x1]  }
   0x6   :  { %13 = vrot.lane.b32.xlu0 %v102_v2, %s133_s16  ;;  %25 = vrot.lane.b32.xlu1 %v104_v3, %s134_s17  ;;  %s139_s7 = smov 56   ;;  %s140_s8 = smov 48   ;;  %v111_v11 = vld [vmem:[%s207_s0 + $0x5] sm:$0x1]   ;;  %v112_v12 = vld [vmem:[%s207_s0 + $0x4] sm:$0x1]  }
   0x7   :  { %s141_s13 = smov 40   ;;  %s142_s14 = smov 32   ;;  %v113_v13 = vld [vmem:[%s207_s0 + $0x3] sm:$0x1]   ;;  %v114_v14 = vld [vmem:[%s207_s0 + $0x2] sm:$0x1]  }
   0x8   :  { %s143_s19 = smov 24   ;;  %s144_s20 = smov 16   ;;  %v115_v15 = vld [vmem:[%s207_s0 + $0x1] sm:$0x1]   ;;  %vm27_vm4 = vcmask 851712   ;;  %vm33_vm5 = vcmask 786112  }
   0x9   :  { %s145_s0 = smov 8   ;;  %vm39_vm6 = vcmask 720512   ;;  %vm45_vm7 = vcmask 654912   ;;  %vm51_vm8 = vcmask 589312   ;;  %vm57_vm9 = vcmask 523712  }
   0xa   :  { %31 = vrot.lane.b32.xlu0 %v105_v4, %s135_s24  ;;  %37 = vrot.lane.b32.xlu1 %v106_v5, %s136_s25  ;;  %vm63_vm10 = vcmask 458112   ;;  %vm69_vm11 = vcmask 392512   ;;  %vm75_vm12 = vcmask 326912   ;;  %vm81_vm13 = vcmask 261312  }
   0xb   :  { %vm87_vm14 = vcmask 195712   ;;  %vm93_vm15 = vcmask 130112  }
   0xe   :  { %43 = vrot.lane.b32.xlu0 %v107_v7, %s137_s30  ;;  %49 = vrot.lane.b32.xlu1 %v108_v8, %s138_s2 }
  0x12   :  { %55 = vrot.lane.b32.xlu0 %v109_v9, %s139_s7  ;;  %61 = vrot.lane.b32.xlu1 %v110_v10, %s140_s8 }
  0x16   :  { %67 = vrot.lane.b32.xlu0 %v111_v11, %s141_s13  ;;  %73 = vrot.lane.b32.xlu1 %v112_v12, %s142_s14 }
  0x1a   :  { %79 = vrot.lane.b32.xlu0 %v113_v13, %s143_s19  ;;  %85 = vrot.lane.b32.xlu1 %v114_v14, %s144_s20 }
  0x1e   :  { %91 = vrot.lane.b32.xlu0 %v115_v15, %s145_s0 }
  0x74   :  { %v8_v16 = vpop.permute.xlu0 %7   ;;  %v20_v17 = vpop.permute.xlu1 %19  }
  0x75   :  { %10 = vst.msk [vmem:[#allocation0] sm:$0x1] %vm9_vm1, %v8_v16  }
  0x78   :  { %v14_v18 = vpop.permute.xlu0 %13   ;;  %v26_v19 = vpop.permute.xlu1 %25  }
  0x79   :  { %16 = vst.msk [vmem:[#allocation0] sm:$0x1] %vm15_vm2, %v14_v18  }
  0x7a   :  { %22 = vst.msk [vmem:[#allocation0] sm:$0x1] %vm21_vm3, %v20_v17  }
  0x7b   :  { %28 = vst.msk [vmem:[#allocation0] sm:$0x1] %vm27_vm4, %v26_v19  }
  0x7c   :  { %v32_v20 = vpop.permute.xlu0 %31   ;;  %v38_v21 = vpop.permute.xlu1 %37  }
  0x7d   :  { %34 = vst.msk [vmem:[#allocation0] sm:$0x1] %vm33_vm5, %v32_v20  }
  0x7e   :  { %40 = vst.msk [vmem:[#allocation0] sm:$0x1] %vm39_vm6, %v38_v21  }
  0x80   :  { %v44_v22 = vpop.permute.xlu0 %43   ;;  %v50_v23 = vpop.permute.xlu1 %49  }
  0x81   :  { %46 = vst.msk [vmem:[#allocation0] sm:$0x1] %vm45_vm7, %v44_v22  }
  0x82   :  { %52 = vst.msk [vmem:[#allocation0] sm:$0x1] %vm51_vm8, %v50_v23  }
  0x84   :  { %v56_v24 = vpop.permute.xlu0 %55   ;;  %v62_v25 = vpop.permute.xlu1 %61  }
  0x85   :  { %58 = vst.msk [vmem:[#allocation0] sm:$0x1] %vm57_vm9, %v56_v24  }
  0x86   :  { %64 = vst.msk [vmem:[#allocation0] sm:$0x1] %vm63_vm10, %v62_v25  }
  0x88   :  { %v68_v26 = vpop.permute.xlu0 %67   ;;  %v74_v27 = vpop.permute.xlu1 %73  }
  0x89   :  { %70 = vst.msk [vmem:[#allocation0] sm:$0x1] %vm69_vm11, %v68_v26  }
  0x8a   :  { %76 = vst.msk [vmem:[#allocation0] sm:$0x1] %vm75_vm12, %v74_v27  }
  0x8c   :  { %v80_v28 = vpop.permute.xlu0 %79   ;;  %v86_v29 = vpop.permute.xlu1 %85  }
  0x8d   :  { %82 = vst.msk [vmem:[#allocation0] sm:$0x1] %vm81_vm13, %v80_v28  }
  0x8e   :  { %88 = vst.msk [vmem:[#allocation0] sm:$0x1] %vm87_vm14, %v86_v29  }
  0x90   :  { %v92_v30 = vpop.permute.xlu0 %91  }
  0x91   :  { %94 = vst.msk [vmem:[#allocation0] sm:$0x1] %vm93_vm15, %v92_v30  }
  0x98   :  { %v98_v31 = vld [vmem:[#allocation0] sm:$0x1] }
  0x99   :  { %100 = vst [vmem:[%s208_s1] sm:$0x1] %v98_v31 }

// kernel: basic_block.1
= control target key start
LH: loop header
LB: loop body
LE: loop exit
PB: predicated region body
PF: predicated region fallthrough
CT: control target
= control target key end

     0   :  { %v1480_v1 = vmov 0.0   ;;  %vm1481_vm0 = vmmov 0   ;;  %v1482_v4 = vmov 0   ;;  %vm48_vm1 = vsmask.f32 7424  ;;  %s1484_s14 = smov 16   ;;  %s1955_s1 = inlined_call_operand.vmem [shape: bf16[384,128], index: 1, kind: input, shape index: {}]   ;;  %s1956_s0 = inlined_call_operand.vmem [shape: f32[64,128], index: 0, kind: input, shape index: {}]   ;;  %s1957_s7 = inlined_call_operand.vmem [shape: f32[48,1], index: 7, kind: input, shape index: {}]   ;;  %s1958_s2 = inlined_call_operand.vmem [shape: bf16[384,128], index: 2, kind: input, shape index: {}]   ;;  %s1959_s3 = inlined_call_operand.vmem [shape: f32[1,128], index: 3, kind: input, shape index: {}]   ;;  %s1960_s4 = inlined_call_operand.vmem [shape: f32[1,128], index: 4, kind: input, shape index: {}]   ;;  %s1961_s5 = inlined_call_operand.vmem [shape: f32[1,128], index: 5, kind: input, shape index: {}]   ;;  %s1962_s6 = inlined_call_operand.vmem [shape: f32[1,128], index: 6, kind: input, shape index: {}]   ;;  %s1963_s8 = inlined_call_operand.vmem [shape: f32[48,128], index: 8, kind: output, shape index: {}]  }
   0x1   :  { %v1422_v0 = vld [vmem:[%s1955_s1 + $0x40] sm:$0xff]   ;;  %1356 = vmatprep.subr.bf16.mxu1 %v1480_v1  ;;  %1372 = vmatprep.mubr.msk.bf16.mxu1 %vm1481_vm0, %v1480_v1  ;;  %v1425_v5 = vld [vmem:[%s1955_s1 + $0x48] sm:$0xff]   ;;  %v1428_v8 = vld [vmem:[%s1955_s1 + $0x50] sm:$0xff]   ;;  %vm84_vm2 = vcmask 1046528   ;;  %vm140_vm3 = vsmask.f32 4352 }
   0x2   :  { %v1423_v2 = vld [vmem:[%s1955_s1] sm:$0xff]   ;;  %1266 = vmatprep.subr.bf16.mxu0 %v1422_v0  ;;  %1420 = vset.pattern.permute.xlu0 %v1482_v4  ;;  %v1426_v6 = vld [vmem:[%s1955_s1 + $0x8] sm:$0xff]   ;;  %v1429_v9 = vld [vmem:[%s1955_s1 + $0x10] sm:$0xff]   ;;  %vm557_vm4 = vcmask 1040384   ;;  %s1485_s15 = smov 32   ;;  %s1486_s16 = smov 64  }
   0x3   :  { %v1424_v3 = vld [vmem:[%s1955_s1 + $0x80] sm:$0xff]   ;;  %1267 = vmatpush3.bf16.msra.mxu0 %v1423_v2  ;;  %1421 = vset.pattern.permute.xlu1 %v1482_v4  ;;  %v1427_v7 = vld [vmem:[%s1955_s1 + $0x88] sm:$0xff]   ;;  %v1430_v10 = vld [vmem:[%s1955_s1 + $0x90] sm:$0xff]   ;;  %vm644_vm5 = vcmask 1043456  }
   0x4   :  { %1357 = vmatpush3.bf16.msra.mxu1 %v1424_v3  ;;  %1268 = vmatprep.subr.bf16.mxu0 %v1425_v5  ;;  %v1431_v11 = vld [vmem:[%s1955_s1 + $0x58] sm:$0xff]   ;;  %v1434_v14 = vld [vmem:[%s1955_s1 + $0x60] sm:$0xff]   ;;  %v1437_v17 = vld [vmem:[%s1955_s1 + $0x68] sm:$0xff]  }
   0x5   :  { %1358 = vmatprep.subr.bf16.mxu1 %v1480_v1  ;;  %v1432_v12 = vld [vmem:[%s1955_s1 + $0x18] sm:$0xff]   ;;  %v1435_v15 = vld [vmem:[%s1955_s1 + $0x20] sm:$0xff]   ;;  %v1438_v18 = vld [vmem:[%s1955_s1 + $0x28] sm:$0xff]  }
   0x6   :  { %v1433_v13 = vld [vmem:[%s1955_s1 + $0x98] sm:$0xff]   ;;  %v1436_v16 = vld [vmem:[%s1955_s1 + $0xa0] sm:$0xff]   ;;  %v1439_v19 = vld [vmem:[%s1955_s1 + $0xa8] sm:$0xff]  }
   0x7   :  { %1269 = vmatpush3.bf16.msra.mxu0 %v1426_v6  ;;  %v1440_v20 = vld [vmem:[%s1955_s1 + $0x70] sm:$0xff]   ;;  %v1443_v23 = vld [vmem:[%s1955_s1 + $0x78] sm:$0xff]   ;;  %v36_v24 = vld [vmem:[%s1956_s0] sm:$0xff] }
   0x8   :  { %1359 = vmatpush3.bf16.msra.mxu1 %v1427_v7  ;;  %1270 = vmatprep.subr.bf16.mxu0 %v1428_v8  ;;  %v1441_v21 = vld [vmem:[%s1955_s1 + $0x30] sm:$0xff]   ;;  %v37_v25 = vld [vmem:[%s1956_s0 + $0x8] sm:$0xff]  ;;  %v39_v27 = vld [vmem:[%s1956_s0 + $0x18] sm:$0xff] }
   0x9   :  { %1360 = vmatprep.subr.bf16.mxu1 %v1480_v1  ;;  %v1442_v22 = vld [vmem:[%s1955_s1 + $0xb0] sm:$0xff]   ;;  %v40_v28 = vld [vmem:[%s1956_s0 + $0x20] sm:$0xff]  ;;  %v41_v29 = vld [vmem:[%s1956_s0 + $0x28] sm:$0xff]  ;;  %v44_v30 = vpack.c.bf16 %v37_v25, %v36_v24 }
   0xa   :  { %v38_v26 = vld [vmem:[%s1956_s0 + $0x10] sm:$0xff]  ;;  %v1626_v32 = vpack.c.bf16 %v41_v29, %v40_v28  ;;  %v30_v33 = vld [vmem:[%s1957_s7] sm:$0xff]  ;;  %v1444_v34 = vld [vmem:[%s1955_s1 + $0x38] sm:$0xff]  }
   0xb   :  { %1271 = vmatpush3.bf16.msra.mxu0 %v1429_v9  ;;  %v45_v31 = vpack.c.bf16 %v39_v27, %v38_v26  ;;  %v1445_v35 = vld [vmem:[%s1955_s1 + $0xb8] sm:$0xff]   ;;  %v50_v36 = vshrl.u32 %v44_v30, 16  ;;  %v52_v37 = vshll.u32 %v44_v30, 16  ;;  %v85_v38 = vrot.slane %v44_v30, 1  ;;  %495 = vperm.xlu0 %1420, %v30_v33   ;;  %v32_v39 = vld [vmem:[%s1957_s7 + $0x10] sm:$0xff]  ;;  %v31_v50 = vld [vmem:[%s1957_s7 + $0x8] sm:$0xff] }
   0xc   :  { %1361 = vmatpush3.bf16.msra.mxu1 %v1430_v10  ;;  %1272 = vmatprep.subr.bf16.mxu0 %v1431_v11  ;;  %v65_v42 = vshll.u32 %v1626_v32, 16  ;;  %v42_v44 = vld [vmem:[%s1956_s0 + $0x30] sm:$0xff]  ;;  %v43_v45 = vld [vmem:[%s1956_s0 + $0x38] sm:$0xff]  ;;  %v88_v49 = vrot.slane %v1626_v32, 1  ;;  %v69_v4 = vshrl.u32 %v1626_v32, 16  ;;  %v34_v5 = vld [vmem:[%s1957_s7 + $0x20] sm:$0xff] }
   0xd   :  { %1362 = vmatprep.subr.bf16.mxu1 %v1480_v1  ;;  %v57_v40 = vshll.u32 %v45_v31, 16  ;;  %v61_v41 = vshrl.u32 %v45_v31, 16  ;;  %v86_v43 = vrot.slane %v45_v31, 1  ;;  %v54_v46 = vrot.slane %v52_v37, 1  ;;  %505 = vperm.xlu1 %1421, %v32_v39   ;;  %v33_v55 = vld [vmem:[%s1957_s7 + $0x18] sm:$0xff]  ;;  %v35_v10 = vld [vmem:[%s1957_s7 + $0x28] sm:$0xff] }
   0xe   :  { %v141_v47 = vrot.slane %v50_v36, 3  ;;  %v142_v48 = vrot.slane %v52_v37, 4  ;;  %v67_v52 = vrot.slane %v65_v42, 1  ;;  %v1657_v59 = vpack.c.bf16 %v43_v45, %v42_v44  ;;  %s1483_s7 = smov 8  }
   0xf   :  { %1273 = vmatpush3.bf16.msra.mxu0 %v1432_v12  ;;  %v59_v51 = vrot.slane %v57_v40, 1  ;;  %v144_v53 = vrot.slane %v61_v41, 3  ;;  %v145_v54 = vrot.slane %v57_v40, 4  ;;  %v55_v56 = vor.u32 %v54_v46, %v50_v36  ;;  %500 = vperm.xlu0 %1420, %v31_v50  }
  0x10   :  { %1363 = vmatpush3.bf16.msra.mxu1 %v1433_v13  ;;  %1274 = vmatprep.subr.bf16.mxu0 %v1434_v14  ;;  %v87_v57 = vsel %vm84_vm2, %v85_v38, %v86_v43  ;;  %v89_v58 = vsel %vm84_vm2, %v86_v43, %v88_v49  ;;  %v143_v61 = vor.u32 %v142_v48, %v141_v47  ;;  %v73_v25 = vshll.u32 %v1657_v59, 16 }
  0x11   :  { %1364 = vmatprep.subr.bf16.mxu1 %v1480_v1  ;;  %v63_v60 = vor.u32 %v61_v41, %v59_v51  ;;  %v166_v62 = vshrl.u32 %v87_v57, 16  ;;  %v169_v63 = vshll.u32 %v87_v57, 16  ;;  %v60_v0 = vsel %vm48_vm1, %v55_v56, %v59_v51  ;;  %510 = vperm.xlu1 %1421, %v33_v55  }
  0x12   :  { %v174_v2 = vshrl.u32 %v89_v58, 16  ;;  %v177_v3 = vshll.u32 %v89_v58, 16  ;;  %v149_v7 = vshrl.u32 %v60_v0, 16  ;;  %v152_v8 = vshll.u32 %v60_v0, 16 }
  0x13   :  { %1275 = vmatpush3.bf16.msra.mxu0 %v1435_v15  ;;  %v68_v6 = vsel %vm48_vm1, %v63_v60, %v67_v52  ;;  %v146_v9 = vor.u32 %v145_v54, %v144_v53  ;;  %v168_v13 = vrot.slane %v166_v62, 3  ;;  %v171_v14 = vrot.slane %v169_v63, 4  ;;  %515 = vperm.xlu0 %1420, %v34_v5  }
  0x14   :  { %1365 = vmatpush3.bf16.msra.mxu1 %v1436_v16  ;;  %1276 = vmatprep.subr.bf16.mxu0 %v1437_v17  ;;  %v157_v11 = vshrl.u32 %v68_v6, 16  ;;  %v160_v12 = vshll.u32 %v68_v6, 16  ;;  %v151_v15 = vrot.slane %v149_v7, 3  ;;  %v154_v16 = vrot.slane %v152_v8, 4 }
  0x15   :  { %1366 = vmatprep.subr.bf16.mxu1 %v1480_v1  ;;  %v176_v17 = vrot.slane %v174_v2, 3  ;;  %520 = vperm.xlu1 %1421, %v35_v10   ;;  %v182_v26 = vrot.slane %v69_v4, 3  ;;  %v183_v28 = vrot.slane %v65_v42, 4  ;;  %v90_v29 = vrot.slane %v1657_v59, 1 }
  0x16   :  { %v77_v30 = vshrl.u32 %v1657_v59, 16  ;;  %v147_v31 = vsel %vm140_vm3, %v143_v61, %v146_v9  ;;  %v75_v33 = vrot.slane %v73_v25, 1  ;;  %v205_v56 = vrot.slane %v73_v25, 4 }
  0x17   :  { %1277 = vmatpush3.bf16.msra.mxu0 %v1438_v18  ;;  %v179_v18 = vrot.slane %v177_v3, 4  ;;  %v184_v42 = vor.u32 %v183_v28, %v182_v26  ;;  %v221_v53 = vshll.u32 %v90_v29, 16 }
  0x18   :  { %1367 = vmatpush3.bf16.msra.mxu1 %v1439_v19  ;;  %1278 = vmatprep.subr.bf16.mxu0 %v1440_v20  ;;  %v159_v19 = vrot.slane %v157_v11, 3  ;;  %v162_v20 = vrot.slane %v160_v12, 4  ;;  %v79_v39 = vor.u32 %v77_v30, %v75_v33  ;;  %v204_v55 = vrot.slane %v77_v30, 3 }
  0x19   :  { %1368 = vmatprep.subr.bf16.mxu1 %v1480_v1  ;;  %v180_v24 = vor.u32 %v179_v18, %v176_v17  ;;  %v185_v58 = vsel %vm140_vm3, %v146_v9, %v184_v42  ;;  %v223_v61 = vrot.slane %v221_v53, 4 }
  0x1a   :  { %v163_v27 = vor.u32 %v162_v20, %v159_v19  ;;  %v209_v45 = vshrl.u32 %v79_v39, 16  ;;  %v212_v46 = vshll.u32 %v79_v39, 16  ;;  %v206_v2 = vor.u32 %v205_v56, %v204_v55 }
  0x1b   :  { %1279 = vmatpush3.bf16.msra.mxu0 %v1441_v21  ;;  %v172_v21 = vor.u32 %v171_v14, %v168_v13 }
  0x1c   :  { %1369 = vmatpush3.bf16.msra.mxu1 %v1442_v22  ;;  %1280 = vmatprep.subr.bf16.mxu0 %v1443_v23  ;;  %v71_v22 = vor.u32 %v69_v4, %v67_v52  ;;  %v155_v23 = vor.u32 %v154_v16, %v151_v15  ;;  %v211_v51 = vrot.slane %v209_v45, 3  ;;  %v214_v52 = vrot.slane %v212_v46, 4 }
  0x1d   :  { %1370 = vmatprep.subr.bf16.mxu1 %v1480_v1  ;;  %v181_v32 = vsel %vm140_vm3, %v172_v21, %v180_v24  ;;  %v207_v4 = vsel %vm140_vm3, %v184_v42, %v206_v2 }
  0x1e   :  { %v76_v36 = vsel %vm48_vm1, %v71_v22, %v75_v33  ;;  %v215_v60 = vor.u32 %v214_v52, %v211_v51 }
  0x1f   :  { %1281 = vmatpush3.bf16.msra.mxu0 %v1444_v34  ;;  %v164_v34 = vsel %vm140_vm3, %v155_v23, %v163_v27  ;;  %v187_v40 = vshrl.u32 %v76_v36, 16  ;;  %v190_v41 = vshll.u32 %v76_v36, 16 }
  0x20   :  { %1371 = vmatpush3.bf16.msra.mxu1 %v1445_v35  ;;  %v91_v35 = vsel %vm84_vm2, %v88_v49, %v90_v29  ;;  %411 = vmatprep.mubr.bf16.mxu0 %v164_v34  ;;  %v218_v49 = vshrl.u32 %v90_v29, 16 }
  0x21   :  { %1384 = vmatprep.subr.bf16.mxu1 %v1480_v1  ;;  %v196_v37 = vshrl.u32 %v91_v35, 16  ;;  %v199_v38 = vshll.u32 %v91_v35, 16  ;;  %v189_v47 = vrot.slane %v187_v40, 3  ;;  %v192_v48 = vrot.slane %v190_v41, 4 }
  0x22   :  { %412 = vmatmul.mubr.bf16.vlgmr.msra.gmra.mrb[0].mxu0 %v147_v31  ;;  %v220_v57 = vrot.slane %v218_v49, 3 }
  0x23   :  { %1373 = vmatmul.mubr.bf16.vlgmr.msra.gmra.mrb[0].mxu1 %v181_v32  ;;  %v198_v43 = vrot.slane %v196_v37, 3  ;;  %v201_v44 = vrot.slane %v199_v38, 4  ;;  %v193_v54 = vor.u32 %v192_v48, %v189_v47 }
  0x24   :  { %1376 = vmatprep.mubr.msk.bf16.mxu1 %vm1481_vm0, %v1480_v1  ;;  %v224_v0 = vor.u32 %v223_v61, %v220_v57 }
  0x25   :  { %v202_v50 = vor.u32 %v201_v44, %v198_v43  ;;  %v194_v62 = vsel %vm140_vm3, %v163_v27, %v193_v54  ;;  %v216_v63 = vsel %vm140_vm3, %v193_v54, %v215_v60 }
  0x26   :  { %419 = vmatprep.mubr.bf16.mxu0 %v194_v62 }
  0x27   :  { %v203_v59 = vsel %vm140_vm3, %v180_v24, %v202_v50  ;;  %v225_v3 = vsel %vm140_vm3, %v202_v50, %v224_v0 }
  0x2a   :  { %420 = vmatmul.mubr.bf16.gmra.mrb[4].mxu0 %v185_v58 }
  0x2b   :  { %1377 = vmatmul.mubr.bf16.gmra.mrb[4].mxu1 %v203_v59  ;;  %427 = vmatprep.mubr.bf16.mxu0 %v216_v63 }
  0x2c   :  { %1380 = vmatprep.mubr.msk.bf16.mxu1 %vm1481_vm0, %v1480_v1 }
  0x32   :  { %428 = vmatmul.mubr.bf16.gmra.mrb[8].mxu0 %v207_v4 }
  0x33   :  { %1381 = vmatmul.mubr.bf16.gmra.mrb[8].mxu1 %v225_v3 }
  0x34   :  { %1400 = vmatprep.mubr.msk.bf16.mxu1 %vm1481_vm0, %v1480_v1 }
  0x8a   :  { %v1689_v7 = vpop.permute.xlu0 %495 }
  0x8c   :  { %v1695_v18 = vpop.permute.xlu1 %505 }
  0x8e   :  { %v1697_v20 = vpop.permute.xlu0 %500 }
  0x90   :  { %v1710_v37 = vpop.permute.xlu1 %510 }
  0x92   :  { %v1719_v56 = vpop.permute.xlu0 %515 }
  0x94   :  { %v1725_v60 = vpop.permute.xlu1 %520 }
  0xf5   :  { %v1282_v8 = vpop.f32.mrb[0].mxu0 }
  0xf6   :  { %v470_v5 = vpop.f32.mrb[0].mxu1  ;;  %v1283_v10 = vpop.f32.mrb[1].mxu0 }
  0xf7   :  { %v1374_v6 = vpop.f32.mrb[1].mxu1  ;;  %v1284_v12 = vadd.f32 %v1283_v10, %v1282_v8  ;;  %v1285_v13 = vpop.f32.mrb[2].mxu0 }
  0xf8   :  { %v473_v9 = vpop.f32.mrb[2].mxu1  ;;  %v1286_v14 = vpop.f32.mrb[3].mxu0 }
  0xf9   :  { %v1375_v11 = vpop.f32.mrb[3].mxu1  ;;  %v1691_v15 = vadd.f32 %v1284_v12, %v470_v5  ;;  %v1287_v16 = vadd.f32 %v1286_v14, %v1285_v13 }
  0xfb   :  { %v1693_v17 = vadd.f32 %v1287_v16, %v473_v9  ;;  %v523_v30 = vmul.f32 %v1689_v7, %v1691_v15 }
  0xfd   :  { %v1288_v22 = vpop.f32.mrb[4].mxu0  ;;  %v524_v26 = vmul.f32 %v1697_v20, %v1693_v17  ;;  %v540_v39 = vmul.f32 %v523_v30, %v1691_v15 }
  0xfe   :  { %v478_v19 = vpop.f32.mrb[4].mxu1  ;;  %v1289_v24 = vpop.f32.mrb[5].mxu0 }
  0xff   :  { %v1378_v21 = vpop.f32.mrb[5].mxu1  ;;  %v1290_v27 = vadd.f32 %v1289_v24, %v1288_v22  ;;  %v1291_v28 = vpop.f32.mrb[6].mxu0  ;;  %v541_v33 = vmul.f32 %v524_v26, %v1693_v17  ;;  %v529_v40 = vadd.f32 %v524_v26, %v523_v30  ;;  %v1446_v30 = vld [vmem:[%s1958_s2 + $0x80] sm:$0xff]  }
 0x100   :  { %v481_v23 = vpop.f32.mrb[6].mxu1  ;;  %v1292_v29 = vpop.f32.mrb[7].mxu0  ;;  %1385 = vmatpush3.bf16.msra.mxu1 %v1446_v30 }
 0x101   :  { %v1379_v25 = vpop.f32.mrb[7].mxu1  ;;  %v1703_v31 = vadd.f32 %v1290_v27, %v478_v19  ;;  %v1293_v32 = vadd.f32 %v1292_v29, %v1291_v28  ;;  %v546_v47 = vadd.f32 %v541_v33, %v540_v39  ;;  %1386 = vmatprep.subr.bf16.mxu1 %v1480_v1  ;;  %v1448_v33 = vld [vmem:[%s1958_s2 + $0x88] sm:$0xff]  }
 0x102   :  { %v1452_v39 = vld [vmem:[%s1958_s2 + $0x8] sm:$0xff]  }
 0x103   :  { %v525_v34 = vmul.f32 %v1695_v18, %v1703_v31  ;;  %v1708_v35 = vadd.f32 %v1293_v32, %v481_v23  ;;  %v1447_v32 = vld [vmem:[%s1958_s2 + $0x40] sm:$0xff]  }
 0x104   :  { %1311 = vmatprep.subr.bf16.mxu0 %v1447_v32  ;;  %1387 = vmatpush3.bf16.msra.mxu1 %v1448_v33 }
 0x105   :  { %v542_v41 = vmul.f32 %v525_v34, %v1703_v31  ;;  %v526_v42 = vmul.f32 %v1710_v37, %v1708_v35  ;;  %v1294_v43 = vpop.f32.mrb[8].mxu0  ;;  %v530_v48 = vadd.f32 %v529_v40, %v525_v34  ;;  %v1449_v34 = vld [vmem:[%s1958_s2] sm:$0xff]   ;;  %1388 = vmatprep.subr.bf16.mxu1 %v1480_v1  ;;  %v1453_v40 = vld [vmem:[%s1958_s2 + $0x50] sm:$0xff]  }
 0x106   :  { %v486_v36 = vpop.f32.mrb[8].mxu1  ;;  %v1295_v45 = vpop.f32.mrb[9].mxu0  ;;  %1312 = vmatpush3.bf16.msra.mxu0 %v1449_v34 }
 0x107   :  { %v1382_v38 = vpop.f32.mrb[9].mxu1  ;;  %v1296_v49 = vadd.f32 %v1295_v45, %v1294_v43  ;;  %v1297_v50 = vpop.f32.mrb[10].mxu0  ;;  %v547_v52 = vadd.f32 %v546_v47, %v542_v41  ;;  %v543_v53 = vmul.f32 %v526_v42, %v1708_v35  ;;  %v531_v57 = vadd.f32 %v530_v48, %v526_v42  ;;  %v1454_v41 = vld [vmem:[%s1958_s2 + $0x98] sm:$0xff]   ;;  %v1455_v42 = vld [vmem:[%s1958_s2 + $0x10] sm:$0xff]   ;;  %v1460_v47 = vld [vmem:[%s1958_s2 + $0xa8] sm:$0xff]  }
 0x108   :  { %v489_v44 = vpop.f32.mrb[10].mxu1  ;;  %v1298_v51 = vpop.f32.mrb[11].mxu0  ;;  %v1451_v38 = vld [vmem:[%s1958_s2 + $0x90] sm:$0xff]   ;;  %v1456_v43 = vld [vmem:[%s1958_s2 + $0x58] sm:$0xff]   ;;  %v1461_v48 = vld [vmem:[%s1958_s2 + $0x20] sm:$0xff]  }
 0x109   :  { %v1383_v46 = vpop.f32.mrb[11].mxu1  ;;  %v1717_v54 = vadd.f32 %v1296_v49, %v486_v36  ;;  %v1299_v55 = vadd.f32 %v1298_v51, %v1297_v50  ;;  %v548_v61 = vadd.f32 %v547_v52, %v543_v53  ;;  %v1450_v36 = vld [vmem:[%s1958_s2 + $0x48] sm:$0xff]   ;;  %1389 = vmatpush3.bf16.msra.mxu1 %v1451_v38  ;;  %v1458_v45 = vld [vmem:[%s1958_s2 + $0x18] sm:$0xff]   ;;  %v1463_v50 = vld [vmem:[%s1958_s2 + $0xb0] sm:$0xff]  }
 0x10a   :  { %1313 = vmatprep.subr.bf16.mxu0 %v1450_v36  ;;  %1390 = vmatprep.subr.bf16.mxu1 %v1480_v1  ;;  %v1459_v46 = vld [vmem:[%s1958_s2 + $0x60] sm:$0xff]   ;;  %v1462_v49 = vld [vmem:[%s1958_s2 + $0x68] sm:$0xff]   ;;  %v1465_v52 = vld [vmem:[%s1958_s2 + $0x70] sm:$0xff]  }
 0x10b   :  { %v527_v58 = vmul.f32 %v1719_v56, %v1717_v54  ;;  %v1723_v59 = vadd.f32 %v1299_v55, %v489_v44  ;;  %1314 = vmatpush3.bf16.msra.mxu0 %v1452_v39  ;;  %v1457_v44 = vld [vmem:[%s1958_s2 + $0xa0] sm:$0xff]   ;;  %v1464_v51 = vld [vmem:[%s1958_s2 + $0x28] sm:$0xff]   ;;  %v1466_v53 = vld [vmem:[%s1958_s2 + $0xb8] sm:$0xff]  }
 0x10c   :  { %1315 = vmatprep.subr.bf16.mxu0 %v1453_v40  ;;  %v1467_v55 = vld [vmem:[%s1958_s2 + $0x30] sm:$0xff]  }
 0x10d   :  { %v532_v62 = vadd.f32 %v531_v57, %v527_v58  ;;  %v544_v63 = vmul.f32 %v527_v58, %v1717_v54  ;;  %v528_v0 = vmul.f32 %v1725_v60, %v1723_v59  ;;  %1391 = vmatpush3.bf16.msra.mxu1 %v1454_v41  ;;  %v1468_v57 = vld [vmem:[%s1958_s2 + $0x78] sm:$0xff]  }
 0x10e   :  { %1392 = vmatprep.subr.bf16.mxu1 %v1480_v1  ;;  %v1469_v58 = vld [vmem:[%s1958_s2 + $0x38] sm:$0xff]  }
 0x10f   :  { %v549_v2 = vadd.f32 %v548_v61, %v544_v63  ;;  %v533_v3 = vadd.f32 %v532_v62, %v528_v0  ;;  %v545_v4 = vmul.f32 %v528_v0, %v1723_v59  ;;  %1316 = vmatpush3.bf16.msra.mxu0 %v1455_v42 }
 0x110   :  { %1317 = vmatprep.subr.bf16.mxu0 %v1456_v43 }
 0x111   :  { %v534_v5 = vrot.slane %v533_v3, 4  ;;  %v550_v6 = vadd.f32 %v549_v2, %v545_v4  ;;  %1393 = vmatpush3.bf16.msra.mxu1 %v1457_v44 }
 0x112   :  { %1394 = vmatprep.subr.bf16.mxu1 %v1480_v1 }
 0x113   :  { %v551_v8 = vrot.slane %v550_v6, 4  ;;  %v535_v9 = vadd.f32 %v534_v5, %v533_v3  ;;  %1318 = vmatpush3.bf16.msra.mxu0 %v1458_v45 }
 0x114   :  { %1319 = vmatprep.subr.bf16.mxu0 %v1459_v46 }
 0x115   :  { %v536_v10 = vrot.slane %v535_v9, 2  ;;  %v552_v11 = vadd.f32 %v551_v8, %v550_v6  ;;  %1395 = vmatpush3.bf16.msra.mxu1 %v1460_v47  ;;  %v1487_v6 = vmov 1966171168  }
 0x116   :  { %1396 = vmatprep.subr.bf16.mxu1 %v1480_v1  ;;  %v583_v8 = vunpack.c.l.s4 %v1487_v6 }
 0x117   :  { %v537_v12 = vadd.f32 %v536_v10, %v535_v9  ;;  %v553_v13 = vrot.slane %v552_v11, 2  ;;  %1320 = vmatpush3.bf16.msra.mxu0 %v1461_v48  ;;  %v585_v9 = vlaneseq }
 0x118   :  { %1321 = vmatprep.subr.bf16.mxu0 %v1462_v49  ;;  %v584_v10 = vunpack.c.0.s8 %v583_v8 }
 0x119   :  { %v538_v14 = vrot.slane %v537_v12, 1  ;;  %v554_v16 = vadd.f32 %v553_v13, %v552_v11  ;;  %1397 = vmatpush3.bf16.msra.mxu1 %v1463_v50  ;;  %v586_v11 = vshrl.u32 %v585_v9, 7 }
 0x11a   :  { %1398 = vmatprep.subr.bf16.mxu1 %v1480_v1 }
 0x11b   :  { %v555_v19 = vrot.slane %v554_v16, 1  ;;  %v539_v21 = vadd.f32 %v538_v14, %v537_v12  ;;  %1322 = vmatpush3.bf16.msra.mxu0 %v1464_v51  ;;  %v1815_v12 = vsub.s32 %v584_v10, %v586_v11 }
 0x11c   :  { %1323 = vmatprep.subr.bf16.mxu0 %v1465_v52 }
 0x11d   :  { %v556_v22 = vadd.f32 %v555_v19, %v554_v16  ;;  %1399 = vmatpush3.bf16.msra.mxu1 %v1466_v53  ;;  %v578_v19 = vld [vmem:[%s1959_s3] sm:$0x1] }
 0x11f   :  { %v558_v23 = vsel %vm557_vm4, %v539_v21, %v556_v22  ;;  %1324 = vmatpush3.bf16.msra.mxu0 %v1467_v55  ;;  %v1821_v21 = vsub.s32 0, %v586_v11 }
 0x120   :  { %559 = vrot.lane.b32.xlu0 %v558_v23, %s1483_s7  ;;  %1325 = vmatprep.subr.bf16.mxu0 %v1468_v57 }
 0x123   :  { %1326 = vmatpush3.bf16.msra.mxu0 %v1469_v58 }
 0x192   :  { %v560_v24 = vpop.permute.xlu0 %559 }
 0x193   :  { %v561_v25 = vadd.f32 %v560_v24, %v558_v23  ;;  %v599_v24 = vld [vmem:[%s1960_s4] sm:$0x1] }
 0x195   :  { %562 = vrot.lane.b32.xlu1 %v561_v25, %s1484_s14 }
 0x207   :  { %v563_v26 = vpop.permute.xlu1 %562 }
 0x208   :  { %v564_v27 = vadd.f32 %v563_v26, %v561_v25 }
 0x20a   :  { %565 = vrot.lane.b32.xlu0 %v564_v27, %s1485_s15 }
 0x27c   :  { %v566_v28 = vpop.permute.xlu0 %565 }
 0x27d   :  { %v567_v29 = vadd.f32 %v566_v28, %v564_v27 }
 0x27f   :  { %568 = vrot.lane.b32.xlu1 %v567_v29, %s1486_s16 }
 0x2f1   :  { %v569_v61 = vpop.permute.xlu1 %568 }
 0x2f2   :  { %v570_v62 = vadd.f32 %v569_v61, %v567_v29 }
 0x2f4   :  { %v571_v63 = vmul.f32 0.001953125, %v570_v62 }
 0x2f6   :  { %v572_v0 = vmul.f32 %v571_v63, %v571_v63 }
 0x2f8   :  { %v574_v2 = vrot.slane %v572_v0, 7 }
 0x2fa   :  { %v576_v3 = vsub.f32 %v571_v63, %v574_v2 }
 0x2fc   :  { %v577_v4 = vmax.f32 %v576_v3, 0.0 }
 0x2fe   :  { %v579_v5 = vadd.f32 1e-05, %v577_v4 }
 0x300   :  { %1470 = vrsqrt.f32 %v579_v5 }
 0x30a   :  { %v1471_v13 = vpop.eup %1470 }
 0x30b   :  { %v588_v14 = vrot.slane %v1471_v13, %v1815_v12 }
 0x30d   :  { %v589_v16 = vcombine.high %v588_v14, %v588_v14 }
 0x30f   :  { %v596_v22 = vrot.slane %v589_v16, %v1815_v12 }
 0x311   :  { %v598_v23 = vmul.f32 %v596_v22, %v578_v19 }
 0x313   :  { %v600_v25 = vmul.f32 %v598_v23, %v571_v63  ;;  %v606_v26 = vrot.slane %v598_v23, %v1821_v21 }
 0x315   :  { %v601_v27 = vsub.f32 %v599_v24, %v600_v25  ;;  %v610_v28 = vmul.f32 %v606_v26, %v1703_v31  ;;  %v611_v29 = vmul.f32 %v606_v26, %v1708_v35  ;;  %v612_v30 = vmul.f32 %v606_v26, %v1717_v54 }
 0x316   :  { %v613_v32 = vmul.f32 %v606_v26, %v1723_v59  ;;  %v608_v34 = vmul.f32 %v606_v26, %v1691_v15  ;;  %v609_v36 = vmul.f32 %v606_v26, %v1693_v17 }
 0x317   :  { %v618_v33 = vrot.slane %v601_v27, %v1821_v21 }
 0x319   :  { %v622_v38 = vadd.f32 %v618_v33, %v610_v28  ;;  %v623_v39 = vadd.f32 %v618_v33, %v611_v29  ;;  %v624_v40 = vadd.f32 %v618_v33, %v612_v30  ;;  %v625_v41 = vadd.f32 %v618_v33, %v613_v32 }
 0x31a   :  { %v620_v42 = vadd.f32 %v618_v33, %v608_v34  ;;  %v621_v43 = vadd.f32 %v618_v33, %v609_v36 }
 0x31b   :  { %v628_v44 = vmax.f32 %v622_v38, 0.0  ;;  %v629_v31 = vmax.f32 %v623_v39, 0.0  ;;  %v630_v45 = vmax.f32 %v624_v40, 0.0  ;;  %v631_v35 = vmax.f32 %v625_v41, 0.0 }
 0x31c   :  { %v626_v46 = vmax.f32 %v620_v42, 0.0  ;;  %v627_v54 = vmax.f32 %v621_v43, 0.0 }
 0x31d   :  { %v634_v59 = vmul.f32 %v628_v44, %v1695_v18  ;;  %v635_v47 = vmul.f32 %v629_v31, %v1710_v37  ;;  %v636_v15 = vmul.f32 %v630_v45, %v1719_v56  ;;  %v637_v17 = vmul.f32 %v631_v35, %v1725_v60 }
 0x31e   :  { %v632_v48 = vmul.f32 %v626_v46, %v1689_v7  ;;  %v633_v49 = vmul.f32 %v627_v54, %v1697_v20 }
 0x31f   :  { %v639_v50 = vpack.c.bf16 %v635_v47, %v634_v59  ;;  %v640_v51 = vpack.c.bf16 %v637_v17, %v636_v15 }
 0x320   :  { %v638_v52 = vpack.c.bf16 %v633_v49, %v632_v48 }
 0x321   :  { %v646_v53 = vrot.slane %v639_v50, 4  ;;  %v648_v55 = vrot.slane %v640_v51, 4 }
 0x322   :  { %v645_v57 = vrot.slane %v638_v52, 4 }
 0x323   :  { %v1842_v58 = vsel %vm644_vm5, %v646_v53, %v648_v55  ;;  %v1851_v10 = vsel %vm644_vm5, %v648_v55, 0 }
 0x324   :  { %v647_v61 = vsel %vm644_vm5, %v645_v57, %v646_v53  ;;  %v653_v62 = vsel %vm644_vm5, 0, %v645_v57  ;;  %v690_v63 = vrot.slane %v1842_v58, 1  ;;  %v671_v0 = vshll.u32 %v1842_v58, 16 }
 0x325   :  { %v687_v2 = vrot.slane %v653_v62, 1  ;;  %v688_v3 = vrot.slane %v647_v61, 1  ;;  %v656_v4 = vshrl.u32 %v653_v62, 16  ;;  %v658_v5 = vshll.u32 %v653_v62, 16 }
 0x326   :  { %v663_v6 = vshll.u32 %v647_v61, 16  ;;  %v667_v8 = vshrl.u32 %v647_v61, 16  ;;  %v673_v9 = vrot.slane %v671_v0, 1  ;;  %v675_v16 = vshrl.u32 %v1842_v58, 16 }
 0x327   :  { %v689_v11 = vsel %vm84_vm2, %v687_v2, %v688_v3  ;;  %v691_v13 = vsel %vm84_vm2, %v688_v3, %v690_v63  ;;  %v660_v14 = vrot.slane %v658_v5, 1  ;;  %v742_v27 = vrot.slane %v656_v4, 3 }
 0x328   :  { %v767_v19 = vshrl.u32 %v689_v11, 16  ;;  %v770_v22 = vshll.u32 %v689_v11, 16  ;;  %v775_v23 = vshrl.u32 %v691_v13, 16  ;;  %v778_v24 = vshll.u32 %v691_v13, 16 }
 0x329   :  { %v661_v25 = vor.u32 %v660_v14, %v656_v4  ;;  %v665_v26 = vrot.slane %v663_v6, 1  ;;  %v743_v28 = vrot.slane %v658_v5, 4  ;;  %v745_v38 = vrot.slane %v667_v8, 3 }
 0x32a   :  { %v769_v29 = vrot.slane %v767_v19, 3  ;;  %v772_v30 = vrot.slane %v770_v22, 4  ;;  %v777_v32 = vrot.slane %v775_v23, 3  ;;  %v780_v33 = vrot.slane %v778_v24, 4 }
 0x32b   :  { %v666_v34 = vsel %vm48_vm1, %v661_v25, %v665_v26  ;;  %v669_v36 = vor.u32 %v667_v8, %v665_v26  ;;  %v746_v39 = vrot.slane %v663_v6, 4  ;;  %v744_v31 = vor.u32 %v743_v28, %v742_v27 }
 0x32c   :  { %v773_v40 = vor.u32 %v772_v30, %v769_v29  ;;  %v781_v41 = vor.u32 %v780_v33, %v777_v32  ;;  %v750_v42 = vshrl.u32 %v666_v34, 16  ;;  %v753_v43 = vshll.u32 %v666_v34, 16 }
 0x32d   :  { %v674_v44 = vsel %vm48_vm1, %v669_v36, %v673_v9  ;;  %v677_v45 = vor.u32 %v675_v16, %v673_v9  ;;  %v678_v35 = vshll.u32 %v1851_v10, 16  ;;  %v747_v17 = vor.u32 %v746_v39, %v745_v38 }
 0x32e   :  { %v782_v46 = vsel %vm140_vm3, %v773_v40, %v781_v41  ;;  %v752_v54 = vrot.slane %v750_v42, 3  ;;  %v755_v59 = vrot.slane %v753_v43, 4  ;;  %v758_v47 = vshrl.u32 %v674_v44, 16 }
 0x32f   :  { %1401 = vmatmul.mubr.bf16.vlgmr.msra.gmra.mrb[12].mxu1 %v782_v46  ;;  %v761_v15 = vshll.u32 %v674_v44, 16  ;;  %v680_v48 = vrot.slane %v678_v35, 1  ;;  %v692_v49 = vrot.slane %v1851_v10, 1  ;;  %v682_v57 = vshrl.u32 %v1851_v10, 16 }
 0x330   :  { %v756_v50 = vor.u32 %v755_v59, %v752_v54  ;;  %v760_v51 = vrot.slane %v758_v47, 3  ;;  %1404 = vmatprep.mubr.msk.bf16.mxu1 %vm1481_vm0, %v1480_v1  ;;  %v748_v5 = vsel %vm140_vm3, %v744_v31, %v747_v17  ;;  %v783_v22 = vrot.slane %v675_v16, 3 }
 0x331   :  { %v763_v52 = vrot.slane %v761_v15, 4  ;;  %v681_v53 = vsel %vm48_vm1, %v677_v45, %v680_v48  ;;  %v693_v55 = vsel %vm84_vm2, %v690_v63, %v692_v49  ;;  %v684_v6 = vor.u32 %v682_v57, %v680_v48 }
 0x332   :  { %v788_v61 = vshrl.u32 %v681_v53, 16  ;;  %v791_v62 = vshll.u32 %v681_v53, 16  ;;  %v797_v2 = vshrl.u32 %v693_v55, 16  ;;  %v800_v3 = vshll.u32 %v693_v55, 16 }
 0x333   :  { %v764_v4 = vor.u32 %v763_v52, %v760_v51  ;;  %v819_v8 = vshrl.u32 %v692_v49, 16  ;;  %v810_v23 = vshrl.u32 %v684_v6, 16  ;;  %v813_v63 = vshll.u32 %v684_v6, 16 }
 0x334   :  { %v790_v9 = vrot.slane %v788_v61, 3  ;;  %v793_v11 = vrot.slane %v791_v62, 4  ;;  %v799_v13 = vrot.slane %v797_v2, 3  ;;  %v802_v14 = vrot.slane %v800_v3, 4 }
 0x335   :  { %v765_v19 = vsel %vm140_vm3, %v756_v50, %v764_v4  ;;  %v784_v25 = vrot.slane %v671_v0, 4  ;;  %v822_v26 = vshll.u32 %v692_v49, 16  ;;  %v812_v27 = vrot.slane %v810_v23, 3 }
 0x336   :  { %1012 = vmatprep.mubr.bf16.mxu0 %v765_v19  ;;  %v794_v10 = vor.u32 %v793_v11, %v790_v9  ;;  %v803_v24 = vor.u32 %v802_v14, %v799_v13  ;;  %v815_v28 = vrot.slane %v813_v63, 4  ;;  %v821_v32 = vrot.slane %v819_v8, 3 }
 0x337   :  { %1013 = vmatmul.mubr.bf16.vlgmr.msra.gmra.mrb[12].mxu0 %v748_v5  ;;  %v824_v33 = vrot.slane %v822_v26, 4  ;;  %v785_v16 = vor.u32 %v784_v25, %v783_v22  ;;  %v805_v0 = vrot.slane %v682_v57, 3  ;;  %v806_v38 = vrot.slane %v678_v35, 4 }
 0x338   :  { %v795_v29 = vsel %vm140_vm3, %v764_v4, %v794_v10  ;;  %v804_v30 = vsel %vm140_vm3, %v781_v41, %v803_v24  ;;  %v816_v34 = vor.u32 %v815_v28, %v812_v27 }
 0x339   :  { %1020 = vmatprep.mubr.bf16.mxu0 %v795_v29  ;;  %1405 = vmatmul.mubr.bf16.gmra.mrb[16].mxu1 %v804_v30  ;;  %v825_v36 = vor.u32 %v824_v33, %v821_v32  ;;  %v786_v58 = vsel %vm140_vm3, %v747_v17, %v785_v16  ;;  %v807_v41 = vor.u32 %v806_v38, %v805_v0 }
 0x33a   :  { %1408 = vmatprep.mubr.msk.bf16.mxu1 %vm1481_vm0, %v1480_v1  ;;  %v817_v39 = vsel %vm140_vm3, %v794_v10, %v816_v34 }
 0x33b   :  { %v826_v40 = vsel %vm140_vm3, %v803_v24, %v825_v36  ;;  %v808_v42 = vsel %vm140_vm3, %v785_v16, %v807_v41 }
 0x33f   :  { %1021 = vmatmul.mubr.bf16.gmra.mrb[16].mxu0 %v786_v58 }
 0x340   :  { %1028 = vmatprep.mubr.bf16.mxu0 %v817_v39 }
 0x341   :  { %1409 = vmatmul.mubr.bf16.gmra.mrb[20].mxu1 %v826_v40 }
 0x347   :  { %1029 = vmatmul.mubr.bf16.gmra.mrb[20].mxu0 %v808_v42 }
 0x402   :  { %v1071_v43 = vpop.f32.mrb[12].mxu1 }
 0x403   :  { %v1402_v44 = vpop.f32.mrb[13].mxu1 }
 0x404   :  { %v1074_v1 = vpop.f32.mrb[14].mxu1 }
 0x405   :  { %v1403_v31 = vpop.f32.mrb[15].mxu1 }
 0x40a   :  { %v1327_v45 = vpop.f32.mrb[12].mxu0 }
 0x40b   :  { %v1328_v46 = vpop.f32.mrb[13].mxu0 }
 0x40c   :  { %v1329_v54 = vadd.f32 %v1328_v46, %v1327_v45  ;;  %v1330_v59 = vpop.f32.mrb[14].mxu0  ;;  %v1079_v35 = vpop.f32.mrb[16].mxu1 }
 0x40d   :  { %v1331_v47 = vpop.f32.mrb[15].mxu0  ;;  %v1406_v15 = vpop.f32.mrb[17].mxu1 }
 0x40e   :  { %v1878_v17 = vadd.f32 %v1329_v54, %v1071_v43  ;;  %v1332_v48 = vadd.f32 %v1331_v47, %v1330_v59  ;;  %v1082_v49 = vpop.f32.mrb[18].mxu1 }
 0x40f   :  { %v1407_v50 = vpop.f32.mrb[19].mxu1 }
 0x410   :  { %v1880_v51 = vadd.f32 %v1332_v48, %v1074_v1  ;;  %v1094_v4 = vmul.f32 %v1878_v17, %v1689_v7 }
 0x412   :  { %v1333_v52 = vpop.f32.mrb[16].mxu0  ;;  %v1095_v55 = vmul.f32 %v1880_v51, %v1697_v20  ;;  %v1111_v20 = vmul.f32 %v1094_v4, %v1878_v17 }
 0x413   :  { %v1334_v53 = vpop.f32.mrb[17].mxu0 }
 0x414   :  { %v1335_v57 = vadd.f32 %v1334_v53, %v1333_v52  ;;  %v1336_v61 = vpop.f32.mrb[18].mxu0  ;;  %v1087_v62 = vpop.f32.mrb[20].mxu1  ;;  %v1112_v11 = vmul.f32 %v1095_v55, %v1880_v51  ;;  %v1100_v19 = vadd.f32 %v1095_v55, %v1094_v4 }
 0x415   :  { %v1337_v2 = vpop.f32.mrb[19].mxu0  ;;  %v1410_v3 = vpop.f32.mrb[21].mxu1 }
 0x416   :  { %v1886_v5 = vadd.f32 %v1335_v57, %v1079_v35  ;;  %v1338_v6 = vadd.f32 %v1337_v2, %v1336_v61  ;;  %v1090_v8 = vpop.f32.mrb[22].mxu1  ;;  %v1117_v10 = vadd.f32 %v1112_v11, %v1111_v20  ;;  %v1148_v11 = vld [vmem:[%s1961_s5] sm:$0x1] }
 0x417   :  { %v1411_v9 = vpop.f32.mrb[23].mxu1 }
 0x418   :  { %v1096_v13 = vmul.f32 %v1886_v5, %v1695_v18  ;;  %v1891_v14 = vadd.f32 %v1338_v6, %v1082_v49 }
 0x41a   :  { %v1113_v22 = vmul.f32 %v1096_v13, %v1886_v5  ;;  %v1097_v7 = vmul.f32 %v1891_v14, %v1710_v37  ;;  %v1339_v23 = vpop.f32.mrb[20].mxu0  ;;  %v1101_v24 = vadd.f32 %v1100_v19, %v1096_v13  ;;  %v1169_v19 = vld [vmem:[%s1962_s6] sm:$0x1] }
 0x41b   :  { %v1340_v63 = vpop.f32.mrb[21].mxu0 }
 0x41c   :  { %v1341_v25 = vadd.f32 %v1340_v63, %v1339_v23  ;;  %v1342_v26 = vpop.f32.mrb[22].mxu0  ;;  %v1118_v28 = vadd.f32 %v1117_v10, %v1113_v22  ;;  %v1114_v18 = vmul.f32 %v1097_v7, %v1891_v14  ;;  %v1102_v32 = vadd.f32 %v1101_v24, %v1097_v7 }
 0x41d   :  { %v1343_v27 = vpop.f32.mrb[23].mxu0 }
 0x41e   :  { %v1088_v29 = vadd.f32 %v1341_v25, %v1087_v62  ;;  %v1344_v30 = vadd.f32 %v1343_v27, %v1342_v26  ;;  %v1119_v34 = vadd.f32 %v1118_v28, %v1114_v18 }
 0x420   :  { %v1098_v33 = vmul.f32 %v1088_v29, %v1719_v56  ;;  %v1091_v16 = vadd.f32 %v1344_v30, %v1090_v8 }
 0x422   :  { %v1103_v36 = vadd.f32 %v1102_v32, %v1098_v33  ;;  %v1115_v58 = vmul.f32 %v1098_v33, %v1088_v29  ;;  %v1099_v37 = vmul.f32 %v1091_v16, %v1725_v60 }
 0x424   :  { %v1120_v0 = vadd.f32 %v1119_v34, %v1115_v58  ;;  %v1104_v38 = vadd.f32 %v1103_v36, %v1099_v37  ;;  %v1116_v39 = vmul.f32 %v1099_v37, %v1091_v16  ;;  %v1478_v58 = vld [vmem:[%s1956_s0 + $0x28] sm:$0xff] }
 0x426   :  { %v1105_v40 = vrot.slane %v1104_v38, 4  ;;  %v1121_v41 = vadd.f32 %v1120_v0, %v1116_v39  ;;  %v1479_v0 = vld [vmem:[%s1956_s0 + $0x30] sm:$0xff] }
 0x428   :  { %v1122_v42 = vrot.slane %v1121_v41, 4  ;;  %v1106_v43 = vadd.f32 %v1105_v40, %v1104_v38 }
 0x42a   :  { %v1107_v44 = vrot.slane %v1106_v43, 2  ;;  %v1123_v1 = vadd.f32 %v1122_v42, %v1121_v41 }
 0x42c   :  { %v1108_v31 = vadd.f32 %v1107_v44, %v1106_v43  ;;  %v1124_v45 = vrot.slane %v1123_v1, 2 }
 0x42e   :  { %v1109_v46 = vrot.slane %v1108_v31, 1  ;;  %v1125_v54 = vadd.f32 %v1124_v45, %v1123_v1 }
 0x430   :  { %v1126_v56 = vrot.slane %v1125_v54, 1  ;;  %v1110_v59 = vadd.f32 %v1109_v46, %v1108_v31 }
 0x432   :  { %v1127_v35 = vadd.f32 %v1126_v56, %v1125_v54 }
 0x434   :  { %v1128_v47 = vsel %vm557_vm4, %v1110_v59, %v1127_v35 }
 0x435   :  { %1129 = vrot.lane.b32.xlu0 %v1128_v47, %s1483_s7 }
 0x4a7   :  { %v1130_v60 = vpop.permute.xlu0 %1129 }
 0x4a8   :  { %v1131_v15 = vadd.f32 %v1130_v60, %v1128_v47 }
 0x4aa   :  { %1132 = vrot.lane.b32.xlu1 %v1131_v15, %s1484_s14 }
 0x51c   :  { %v1133_v48 = vpop.permute.xlu1 %1132 }
 0x51d   :  { %v1134_v49 = vadd.f32 %v1133_v48, %v1131_v15 }
 0x51f   :  { %1135 = vrot.lane.b32.xlu0 %v1134_v49, %s1485_s15 }
 0x591   :  { %v1136_v50 = vpop.permute.xlu0 %1135 }
 0x592   :  { %v1137_v52 = vadd.f32 %v1136_v50, %v1134_v49 }
 0x594   :  { %1138 = vrot.lane.b32.xlu1 %v1137_v52, %s1486_s16 }
 0x606   :  { %v1139_v53 = vpop.permute.xlu1 %1138 }
 0x607   :  { %v1140_v55 = vadd.f32 %v1139_v53, %v1137_v52 }
 0x609   :  { %v1141_v57 = vmul.f32 0.001953125, %v1140_v55 }
 0x60b   :  { %v1142_v61 = vmul.f32 %v1141_v57, %v1141_v57 }
 0x60d   :  { %v1144_v62 = vrot.slane %v1142_v61, 7 }
 0x60f   :  { %v1146_v2 = vsub.f32 %v1141_v57, %v1144_v62 }
 0x611   :  { %v1147_v3 = vmax.f32 %v1146_v2, 0.0 }
 0x613   :  { %v1149_v4 = vadd.f32 1e-05, %v1147_v3 }
 0x615   :  { %1472 = vrsqrt.f32 %v1149_v4 }
 0x61f   :  { %v1473_v6 = vpop.eup %1472 }
 0x620   :  { %v1158_v8 = vrot.slane %v1473_v6, %v1815_v12 }
 0x622   :  { %v1159_v9 = vcombine.high %v1158_v8, %v1158_v8 }
 0x624   :  { %v1166_v13 = vrot.slane %v1159_v9, %v1815_v12 }
 0x626   :  { %v1168_v20 = vmul.f32 %v1166_v13, %v1148_v11 }
 0x628   :  { %v1170_v22 = vmul.f32 %v1168_v20, %v1141_v57  ;;  %v1176_v7 = vrot.slane %v1168_v20, %v1821_v21 }
 0x62a   :  { %v1171_v23 = vsub.f32 %v1169_v19, %v1170_v22  ;;  %v1178_v63 = vmul.f32 %v1176_v7, %v1878_v17  ;;  %v1179_v10 = vmul.f32 %v1176_v7, %v1880_v51  ;;  %v1180_v24 = vmul.f32 %v1176_v7, %v1886_v5  ;;  %v1474_v17 = vld [vmem:[%s1956_s0 + $0x8] sm:$0xff]  ;;  %v1475_v51 = vld [vmem:[%s1956_s0 + $0x10] sm:$0xff] }
 0x62b   :  { %v1181_v25 = vmul.f32 %v1176_v7, %v1891_v14  ;;  %v1182_v12 = vmul.f32 %v1176_v7, %v1088_v29  ;;  %v1183_v27 = vmul.f32 %v1176_v7, %v1091_v16  ;;  %v1477_v29 = vld [vmem:[%s1956_s0 + $0x20] sm:$0xff] }
 0x62c   :  { %v1188_v26 = vrot.slane %v1171_v23, %v1821_v21  ;;  %v1476_v21 = vld [vmem:[%s1956_s0 + $0x18] sm:$0xff] }
 0x62e   :  { %v1190_v28 = vadd.f32 %v1188_v26, %v1178_v63  ;;  %v1191_v18 = vadd.f32 %v1188_v26, %v1179_v10  ;;  %v1192_v30 = vadd.f32 %v1188_v26, %v1180_v24  ;;  %v1193_v32 = vadd.f32 %v1188_v26, %v1181_v25 }
 0x62f   :  { %v1194_v33 = vadd.f32 %v1188_v26, %v1182_v12  ;;  %v1195_v34 = vadd.f32 %v1188_v26, %v1183_v27 }
 0x630   :  { %v1196_v36 = vadd.f32 %v1474_v17, %v1190_v28  ;;  %v1197_v5 = vadd.f32 %v1475_v51, %v1191_v18  ;;  %v1198_v14 = vadd.f32 %v1476_v21, %v1192_v30  ;;  %v1199_v16 = vadd.f32 %v1477_v29, %v1193_v32 }
 0x631   :  { %v1200_v37 = vadd.f32 %v1478_v58, %v1194_v33  ;;  %v1201_v38 = vadd.f32 %v1479_v0, %v1195_v34 }
 0x632   :  { %v1202_v39 = vmax.f32 %v1196_v36, 0.0  ;;  %v1203_v40 = vmax.f32 %v1197_v5, 0.0  ;;  %v1204_v41 = vmax.f32 %v1198_v14, 0.0  ;;  %v1205_v42 = vmax.f32 %v1199_v16, 0.0 }
 0x633   :  { %v1206_v43 = vmax.f32 %v1200_v37, 0.0  ;;  %v1207_v44 = vmax.f32 %v1201_v38, 0.0 }
 0x634   :  { %1208 = vst [vmem:[%s1963_s8] sm:$0xff] %v1202_v39  ;;  %1209 = vst [vmem:[%s1963_s8 + $0x8] sm:$0xff] %v1203_v40 }
 0x635   :  { %1210 = vst [vmem:[%s1963_s8 + $0x10] sm:$0xff] %v1204_v41  ;;  %1211 = vst [vmem:[%s1963_s8 + $0x18] sm:$0xff] %v1205_v42 }
 0x636   :  { %1212 = vst [vmem:[%s1963_s8 + $0x20] sm:$0xff] %v1206_v43  ;;  %1213 = vst [vmem:[%s1963_s8 + $0x28] sm:$0xff] %v1207_v44 }

</bundles_post_ra>
